<compile_context>
chip_gen: v6e
topology: v6e:2x2x1
jax: 0.10.0
libtpu: 0.0.40
codegen_flags: <defaults>
</compile_context>

<pallas_src>
import math
import jax
import jax.numpy as jnp
from jax.experimental import pallas as pl
from jax.experimental.pallas import tpu as pltpu


def _round_up(n, m):
    return ((n + m - 1) // m) * m


def _cdiv(a, b):
    return -(-a // b)


def _mlp_kernel(x_ref, w1_ref, b1_ref, w2_ref, b2_ref, o_ref, xpad_ref):
    """x (tb, in_size) f32 -> o (tb, out_size) f32.  w1/w2 are lane-padded, b2 is not."""
    in_size = x_ref.shape[1]
    out_size = o_ref.shape[1]

    # Lane-pad x into a zeroed VMEM scratch (cast to matmul dtype on the way).
    # Zeroing every step keeps the pad lanes deterministic on every core (scratch is
    # uninitialized VMEM otherwise); cost is a tiny VPU/VMEM fill hidden under the DMA.
    if in_size == xpad_ref.shape[1]:
        xpad_ref[...] = x_ref[...].astype(xpad_ref.dtype)
    else:
        xpad_ref[...] = jnp.zeros_like(xpad_ref)
        xpad_ref[:, :in_size] = x_ref[...].astype(xpad_ref.dtype)

    # Layer 1: MXU matmul with f32 accumulation, f32 bias + ReLU epilogue (VPU).
    h = jnp.dot(xpad_ref[...], w1_ref[...], preferred_element_type=jnp.float32)
    h = jnp.maximum(h + b1_ref[...], 0.0)
    h = h.astype(w2_ref.dtype)

    # Layer 2: MXU matmul (lane-dense weights), then keep only the real output columns.
    y = jnp.dot(h, w2_ref[...], preferred_element_type=jnp.float32)
    o_ref[...] = (y[:, :out_size] + b2_ref[...]).astype(o_ref.dtype)


def prepare_qnet_params(w1, b1, w2, b2, *, use_bf16=True):
    """Pad weights once (hoisted out of the per-call path) and pick the matmul dtype.

    w1: (in, hid), b1: (1, hid), w2: (hid, out), b2: (1, out) — all float32.
    """
    in_size, hid = w1.shape
    out_size = w2.shape[1]
    in_p = _round_up(in_size, 128)
    hid_p = _round_up(hid, 128)
    out_p = _round_up(out_size, 128)
    mm = jnp.bfloat16 if use_bf16 else jnp.float32

    w1_p = jnp.zeros((in_p, hid_p), mm).at[:in_size, :hid].set(w1.astype(mm))
    b1_p = jnp.zeros((1, hid_p), jnp.float32).at[:, :hid].set(b1.astype(jnp.float32))
    w2_p = jnp.zeros((hid_p, out_p), mm).at[:hid, :out_size].set(w2.astype(mm))
    b2_p = b2.astype(jnp.float32).reshape(1, out_size)       # kept unpadded (narrow output)
    return {"w1": w1_p, "b1": b1_p, "w2": w2_p, "b2": b2_p}


def linear_qnet_forward(x, params, *, batch_tile=1024):
    """Forward pass of Linear_QNet as a single Pallas kernel.

    x: (B, input_size) float32; params from prepare_qnet_params(); returns (B, output) f32.
    """
    w1_p, b1_p, w2_p, b2_p = params["w1"], params["b1"], params["w2"], params["b2"]
    B, in_size = x.shape
    in_p, hid_p = w1_p.shape
    out_p = w2_p.shape[1]
    out_size = b2_p.shape[1]
    mm_dtype = w1_p.dtype

    # Batch tile: multiple of 16 for bf16 (16 sublanes/vreg), 8 for f32.  For large B,
    # shrink the tile so the grid has >= 4 steps (>= 2 steps per TC on v7x) so the
    # double-buffered DMA pipeline actually overlaps prefetch/writeback with compute.
    sub = 16 if mm_dtype == jnp.bfloat16 else 8
    if B <= batch_tile:
        tb = _round_up(max(B, 1), sub)
    else:
        tb = min(_round_up(batch_tile, sub), _round_up(_cdiv(B, 4), sub))
    tb = max(tb, sub)
    grid_b = _cdiv(B, tb)
    b_p = grid_b * tb

    # Row-pad the batch only (lanes stay at the true in_size -> no wide pad pass over x).
    if b_p != B:
        x = jnp.pad(x, ((0, b_p - B), (0, 0)))

    flops = 2 * b_p * (in_p * hid_p + hid_p * out_p)
    bytes_accessed = (
        b_p * in_size * x.dtype.itemsize              # real x read
        + b_p * out_size * 4                          # real out write
        + w1_p.size * w1_p.dtype.itemsize + w2_p.size * w2_p.dtype.itemsize
        + b1_p.size * 4 + b2_p.size * 4)
    cost = pl.CostEstimate(flops=flops, transcendentals=0, bytes_accessed=bytes_accessed)

    out = pl.pallas_call(
        _mlp_kernel,
        out_shape=jax.ShapeDtypeStruct((b_p, out_size), jnp.float32),
        grid=(grid_b,),
        in_specs=[
            pl.BlockSpec((tb, in_size), lambda i: (i, 0)),   # x: unpadded lanes, batch-tiled
            pl.BlockSpec((in_p, hid_p), lambda i: (0, 0)),   # weights/biases stay resident
            pl.BlockSpec((1, hid_p), lambda i: (0, 0)),
            pl.BlockSpec((hid_p, out_p), lambda i: (0, 0)),
            pl.BlockSpec((1, out_size), lambda i: (0, 0)),
        ],
        out_specs=pl.BlockSpec((tb, out_size), lambda i: (i, 0)),  # narrow (real cols only)
        scratch_shapes=[pltpu.VMEM((tb, in_p), mm_dtype)],         # in-kernel lane pad of x
        compiler_params=pltpu.CompilerParams(
            dimension_semantics=("parallel",)),                    # megacore-shard the batch
        cost_estimate=cost,
    )(x, w1_p, b1_p, w2_p, b2_p)

    return out if b_p == B else out[:B]


def _reference(x, w1, b1, w2, b2, use_bf16):
    """Pure-JAX reference with the same dtype handling as the kernel."""
    dt = jnp.bfloat16 if use_bf16 else jnp.float32
    xr = x.astype(dt).astype(jnp.float32)
    w1r = w1.astype(dt).astype(jnp.float32)
    w2r = w2.astype(dt).astype(jnp.float32)
    h = jnp.maximum(xr @ w1r + b1, 0.0)
    h = h.astype(dt).astype(jnp.float32)
    return h @ w2r + b2


def init_linear_qnet_params(key, input_size, hidden_size, output_size):
    """Deterministic init mimicking torch.nn.Linear's U(-1/sqrt(fan_in), 1/sqrt(fan_in))."""
    k1, k2, k3, k4 = jax.random.split(key, 4)
    bound1 = 1.0 / math.sqrt(input_size)
    bound2 = 1.0 / math.sqrt(hidden_size)
    w1 = jax.random.uniform(k1, (input_size, hidden_size), jnp.float32, -bound1, bound1)
    b1 = jax.random.uniform(k2, (1, hidden_size), jnp.float32, -bound1, bound1)
    w2 = jax.random.uniform(k3, (hidden_size, output_size), jnp.float32, -bound2, bound2)
    b2 = jax.random.uniform(k4, (1, output_size), jnp.float32, -bound2, bound2)
    return w1, b1, w2, b2


if __name__ == "__main__":
    # Snake Q-net shapes: 11 state features, 32 hidden units, 3 actions.
    input_size, hidden_size, output_size = 11, 32, 3

    key = jax.random.PRNGKey(0)
    kx, kb, kr, kp = jax.random.split(key, 4)
    w1, b1, w2, b2 = init_linear_qnet_params(kp, input_size, hidden_size, output_size)

    # Padded params are built once and reused (hoisted out of the forward path).
    params_f32 = prepare_qnet_params(w1, b1, w2, b2, use_bf16=False)
    params_bf16 = prepare_qnet_params(w1, b1, w2, b2, use_bf16=True)

    # --- Test 1: tiny inference batch, f32 matmuls ---
    x_small = jax.random.normal(kx, (4, input_size), jnp.float32)
    out = jax.block_until_ready(linear_qnet_forward(x_small, params_f32))
    ref = _reference(x_small, w1, b1, w2, b2, use_bf16=False)
    assert out.shape == (4, output_size)
    assert jnp.allclose(out, ref, atol=1e-4, rtol=1e-4)

    # --- Test 2: tiny inference batch, bf16 matmul inputs (f32 accumulation) ---
    out_bf = jax.block_until_ready(linear_qnet_forward(x_small, params_bf16))
    ref_bf = _reference(x_small, w1, b1, w2, b2, use_bf16=True)
    assert jnp.allclose(out_bf, ref_bf, atol=1e-3, rtol=1e-3)

    # --- Test 3: replay batch that is not a tile multiple (multi-step grid, row pad) ---
    x_big = jax.random.normal(kb, (300, input_size), jnp.float32)
    out_big = jax.block_until_ready(
        linear_qnet_forward(x_big, params_bf16, batch_tile=128))
    ref_big = _reference(x_big, w1, b1, w2, b2, use_bf16=True)
    assert out_big.shape == (300, output_size)
    assert jnp.allclose(out_big, ref_big, atol=1e-3, rtol=1e-3)

    # --- Test 4: larger replay batch on the default (big-tile, >=4 grid steps) path ---
    x_replay = jax.random.normal(kr, (2500, input_size), jnp.float32)
    out_rep = jax.block_until_ready(linear_qnet_forward(x_replay, params_bf16))
    ref_rep = _reference(x_replay, w1, b1, w2, b2, use_bf16=True)
    assert out_rep.shape == (2500, output_size)
    assert jnp.allclose(out_rep, ref_rep, atol=1e-3, rtol=1e-3)

    print("KERNEL_OK")
</pallas_src>

<mosaic_0001>
module attributes {stable_mosaic.version = 11 : i64} {
  func.func @_mlp_kernel(%arg0: i32, %arg1: memref<8x11xf32, #tpu.memory_space<vmem>>, %arg2: memref<128x128xf32, #tpu.memory_space<vmem>>, %arg3: memref<1x128xf32, #tpu.memory_space<vmem>>, %arg4: memref<128x128xf32, #tpu.memory_space<vmem>>, %arg5: memref<1x3xf32, #tpu.memory_space<vmem>>, %arg6: memref<8x3xf32, #tpu.memory_space<vmem>>, %arg7: memref<8x128xf32, #tpu.memory_space<vmem>>) attributes {dimension_semantics = [#tpu.dimension_semantics<parallel>], iteration_bounds = array<i64: 1>, scalar_prefetch = 0 : i64, scratch_operands = 1 : i64, tpu.core_type = #tpu.core_type<tc>, window_params = [{transform_indices = @transform_0, window_bounds = array<i64: 8, 11>}, {pipeline_mode = #tpu.pipeline_mode<synchronous>, transform_indices = @transform_1, window_bounds = array<i64: 128, 128>}, {pipeline_mode = #tpu.pipeline_mode<synchronous>, transform_indices = @transform_2, window_bounds = array<i64: 1, 128>}, {pipeline_mode = #tpu.pipeline_mode<synchronous>, transform_indices = @transform_3, window_bounds = array<i64: 128, 128>}, {pipeline_mode = #tpu.pipeline_mode<synchronous>, transform_indices = @transform_4, window_bounds = array<i64: 1, 3>}, {transform_indices = @transform_5, window_bounds = array<i64: 8, 3>}]} {
    %cst = arith.constant 0.000000e+00 : f32
    %0 = vector.broadcast %cst : f32 to vector<8x128xf32>
    %c0 = arith.constant 0 : index
    %c0_0 = arith.constant 0 : index
    %1 = vector.load %arg7[%c0, %c0_0] : memref<8x128xf32, #tpu.memory_space<vmem>>, vector<8x128xf32>
    tpu.vector_store %arg7[%c0, %c0_0], %0 {strides = array<i32>} : memref<8x128xf32, #tpu.memory_space<vmem>>, vector<8x128xf32>,
    %c0_1 = arith.constant 0 : index
    %c0_2 = arith.constant 0 : index
    %2 = vector.load %arg1[%c0_1, %c0_2] : memref<8x11xf32, #tpu.memory_space<vmem>>, vector<8x11xf32>
    %c0_3 = arith.constant 0 : index
    %c0_4 = arith.constant 0 : index
    %3 = vector.load %arg7[%c0_3, %c0_4] : memref<8x128xf32, #tpu.memory_space<vmem>>, vector<8x11xf32>
    tpu.vector_store %arg7[%c0_3, %c0_4], %2 {strides = array<i32>} : memref<8x128xf32, #tpu.memory_space<vmem>>, vector<8x11xf32>,
    %c0_5 = arith.constant 0 : index
    %c0_6 = arith.constant 0 : index
    %4 = vector.load %arg7[%c0_5, %c0_6] : memref<8x128xf32, #tpu.memory_space<vmem>>, vector<8x128xf32>
    %c0_7 = arith.constant 0 : index
    %c0_8 = arith.constant 0 : index
    %5 = vector.load %arg2[%c0_7, %c0_8] : memref<128x128xf32, #tpu.memory_space<vmem>>, vector<128x128xf32>
    %cst_9 = arith.constant dense<0.000000e+00> : vector<8x128xf32>
    %6 = tpu.matmul %4, %5, %cst_9 {dimension_numbers = #tpu.dot_dimension_numbers<[1], [0], [0], [1], [0, 0, 1, 1], [], []>} : vector<8x128xf32>, vector<128x128xf32>, vector<8x128xf32> -> vector<8x128xf32>
    %c0_10 = arith.constant 0 : index
    %c0_11 = arith.constant 0 : index
    %7 = vector.load %arg3[%c0_10, %c0_11] : memref<1x128xf32, #tpu.memory_space<vmem>>, vector<1x128xf32>
    %8 = vector.broadcast %7 : vector<1x128xf32> to vector<8x128xf32>
    %9 = arith.addf %6, %8 : vector<8x128xf32>
    %cst_12 = arith.constant 0.000000e+00 : f32
    %10 = vector.broadcast %cst_12 : f32 to vector<8x128xf32>
    %11 = arith.maximumf %9, %10 : vector<8x128xf32>
    %c0_13 = arith.constant 0 : index
    %c0_14 = arith.constant 0 : index
    %12 = vector.load %arg4[%c0_13, %c0_14] : memref<128x128xf32, #tpu.memory_space<vmem>>, vector<128x128xf32>
    %cst_15 = arith.constant dense<0.000000e+00> : vector<8x128xf32>
    %13 = tpu.matmul %11, %12, %cst_15 {dimension_numbers = #tpu.dot_dimension_numbers<[1], [0], [0], [1], [0, 0, 1, 1], [], []>} : vector<8x128xf32>, vector<128x128xf32>, vector<8x128xf32> -> vector<8x128xf32>
    %14 = vector.extract_strided_slice %13 {offsets = [0, 0], sizes = [8, 3], strides = [1, 1]} : vector<8x128xf32> to vector<8x3xf32>
    %c0_16 = arith.constant 0 : index
    %c0_17 = arith.constant 0 : index
    %15 = vector.load %arg5[%c0_16, %c0_17] : memref<1x3xf32, #tpu.memory_space<vmem>>, vector<1x3xf32>
    %16 = vector.broadcast %15 : vector<1x3xf32> to vector<8x3xf32>
    %17 = arith.addf %14, %16 : vector<8x3xf32>
    %c0_18 = arith.constant 0 : index
    %c0_19 = arith.constant 0 : index
    %18 = vector.load %arg6[%c0_18, %c0_19] : memref<8x3xf32, #tpu.memory_space<vmem>>, vector<8x3xf32>
    tpu.vector_store %arg6[%c0_18, %c0_19], %17 {strides = array<i32>} : memref<8x3xf32, #tpu.memory_space<vmem>>, vector<8x3xf32>,
    return
  }
  func.func @transform_0(%arg0: i32) -> (i32, i32) {
    %c0_i32 = arith.constant 0 : i32
    %c0_i32_0 = arith.constant 0 : i32
    return %arg0, %c0_i32 : i32, i32
  }
  func.func @transform_1(%arg0: i32) -> (i32, i32) {
    %c0_i32 = arith.constant 0 : i32
    %c0_i32_0 = arith.constant 0 : i32
    %c0_i32_1 = arith.constant 0 : i32
    return %c0_i32, %c0_i32_0 : i32, i32
  }
  func.func @transform_2(%arg0: i32) -> (i32, i32) {
    %c0_i32 = arith.constant 0 : i32
    %c0_i32_0 = arith.constant 0 : i32
    %c0_i32_1 = arith.constant 0 : i32
    return %c0_i32, %c0_i32_0 : i32, i32
  }
  func.func @transform_3(%arg0: i32) -> (i32, i32) {
    %c0_i32 = arith.constant 0 : i32
    %c0_i32_0 = arith.constant 0 : i32
    %c0_i32_1 = arith.constant 0 : i32
    return %c0_i32, %c0_i32_0 : i32, i32
  }
  func.func @transform_4(%arg0: i32) -> (i32, i32) {
    %c0_i32 = arith.constant 0 : i32
    %c0_i32_0 = arith.constant 0 : i32
    %c0_i32_1 = arith.constant 0 : i32
    return %c0_i32, %c0_i32_0 : i32, i32
  }
  func.func @transform_5(%arg0: i32) -> (i32, i32) {
    %c0_i32 = arith.constant 0 : i32
    %c0_i32_0 = arith.constant 0 : i32
    return %arg0, %c0_i32 : i32, i32
  }
}

</mosaic_0001>

<bundles_post_ra>
// kernel: tpu_custom_call.1
= control target key start
LH: loop header
LB: loop body
LE: loop exit
PB: predicated region body
PF: predicated region fallthrough
CT: control target
= control target key end

     0   :  { %10 = vsyncpa [#allocation4], 0  ;;  %s527_s0 = inlined_call_operand.hbm [shape: f32[8,11], index: 0, kind: input, shape index: {}]   ;;  %s528_s1 = inlined_call_operand.hbm [shape: f32[128,128], index: 1, kind: input, shape index: {}]   ;;  %s529_s2 = inlined_call_operand.vmem [shape: f32[1,128], index: 2, kind: input, shape index: {}]   ;;  %s530_s3 = inlined_call_operand.hbm [shape: f32[128,128], index: 3, kind: input, shape index: {}]   ;;  %s531_s4 = inlined_call_operand.vmem [shape: f32[1,3], index: 4, kind: input, shape index: {}]   ;;  %s532_s5 = inlined_call_operand.vmem [shape: f32[8,3], index: 5, kind: output, shape index: {}]  }
   0x1   :  { %11 = vsyncpa [#allocation6], 0  ;;  %s437_s18 = smov [#allocation5]  }
   0x2   :  { %s27_s19 = sshll.u32 %s437_s18, 4  ;;  %s28_s19 = int_to_ptr.vmem [resolvable:$true] %s27_s19 }
   0x3   :  { %s381_s20 = scalar_lea.vmem %s28_s19, 2048  ;;  %p386_p1 = scmp.lt.s32.totalorder %s28_s19, %s28_s19 }
   0x4   :  { %p382_p0 = scmp.ne.s32.totalorder %s28_s19, %s381_s20  ;;  %p387_p2 = scmp.lt.s32.totalorder %s381_s20, %s381_s20 }
   0x6   :  { %p388_p3 = por %p387_p2, %p386_p1 }
   0x8   :  { %p389_p4 = pnand %p388_p3, %p382_p0 }
   0xa   :  { %392 = shalt.err (!%p389_p4)
}
   0xb   :  { %s438_s21 = smov 128   ;;  %s439_s22 = smov 8  }
   0xc   :  { %33 = dma.hbm_to_vmem [thread:$0]  %s528_s1, 2048, %s28_s19, [#allocation6], %s438_s21, %s438_s21, %s439_s22  }
   0xd   :  { %s440_s25 = smov [#allocation3]   ;;  %s441_s27 = smov [#allocation7]  }
   0xe   :  { %s18_s26 = sshll.u32 %s440_s25, 4  ;;  %s41_s28 = sshll.u32 %s441_s27, 4  ;;  %s19_s26 = int_to_ptr.vmem [resolvable:$true] %s18_s26  ;;  %s42_s28 = int_to_ptr.vmem [resolvable:$true] %s41_s28 }
   0xf   :  { %s401_s29 = scalar_lea.vmem %s19_s26, 128  ;;  %p406_p6 = scmp.lt.s32.totalorder %s19_s26, %s19_s26 }
  0x10   :  { %p402_p5 = scmp.ne.s32.totalorder %s19_s26, %s401_s29  ;;  %p407_p7 = scmp.lt.s32.totalorder %s401_s29, %s401_s29 }
  0x12   :  { %p408_p8 = por %p407_p7, %p406_p6 }
  0x14   :  { %p409_p9 = pnand %p408_p8, %p402_p5 }
  0x16   :  { %412 = shalt.err (!%p409_p9)
}
  0x17   :  { %21 = dma.hbm_to_vmem [thread:$0]  %s527_s0, 128, %s19_s26, [#allocation4]  }
  0x18   :  { %s421_s7 = scalar_lea.vmem %s42_s28, 2048  ;;  %p426_p11 = scmp.lt.s32.totalorder %s42_s28, %s42_s28 }
  0x19   :  { %p422_p10 = scmp.ne.s32.totalorder %s42_s28, %s421_s7  ;;  %p427_p12 = scmp.lt.s32.totalorder %s421_s7, %s421_s7 }
  0x1b   :  { %p428_p13 = por %p427_p12, %p426_p11 }
  0x1d   :  { %p429_p0 = pnand %p428_p13, %p422_p10 }
  0x1f   :  { %432 = shalt.err (!%p429_p0)
}
  0x20   :  { %47 = dma.hbm_to_vmem [thread:$0]  %s530_s3, 2048, %s42_s28, [#allocation6], %s438_s21, %s438_s21, %s439_s22  }
  0x21   :  { %433 = dma.done.wait [#allocation4], 128  }
  0x22   :  { %434 = vsyncadd [#allocation4], 4294967168 }
  0x23   :  { %435 = dma.done.wait [#allocation6], 4096  }
  0x24   :  { %436 = vsyncadd [#allocation6], 4294963200  ;;  %v442_v0 = vmov 0.0   ;;  %vm443_vm0 = vmmov 0   ;;  %v79_v1 = vld [vmem:[#allocation5 + $0x78] sm:$0xff]  ;;  %v78_v2 = vld [vmem:[#allocation5 + $0x70] sm:$0xff] }
  0x25   :  { %296 = vmatprep.subr.mxu0 %v442_v0  ;;  %59 = vst [vmem:[#allocation2] sm:$0xff] %v442_v0  ;;  %328 = vmatprep.mubr.msk.f32.mxu0 %vm443_vm0, %v442_v0  ;;  %v77_v3 = vld [vmem:[#allocation5 + $0x68] sm:$0xff]  ;;  %vm61_vm1 = vcmask 89088   ;;  %v76_v4 = vld [vmem:[#allocation5 + $0x60] sm:$0xff]  ;;  %v60_v5 = vld [vmem:[#allocation3] sm:$0xff]  ;;  %vm252_vm2 = vcmask 23552  }
  0x26   :  { %331 = vmatprep.subr.mxu1 %v442_v0  ;;  %363 = vmatprep.mubr.msk.f32.mxu1 %vm443_vm0, %v442_v0  ;;  %v173_v6 = vld [vmem:[#allocation7 + $0x78] sm:$0xff]  ;;  %62 = vst.msk [vmem:[#allocation2] sm:$0xff] %vm61_vm1, %v60_v5  ;;  %v172_v8 = vld [vmem:[#allocation7 + $0x70] sm:$0xff]  ;;  %v171_v9 = vld [vmem:[#allocation7 + $0x68] sm:$0xff] }
  0x27   :  { %297 = vmatpush3.msra.mxu0 %v79_v1  ;;  %v75_v7 = vld [vmem:[#allocation5 + $0x58] sm:$0xff]  ;;  %332 = vmatpush3.msra.mxu1 %v173_v6  ;;  %v74_v10 = vld [vmem:[#allocation5 + $0x50] sm:$0xff]  ;;  %v170_v11 = vld [vmem:[#allocation7 + $0x60] sm:$0xff] }
  0x28   :  { %298 = vmatprep.subr.mxu0 %v442_v0  ;;  %333 = vmatprep.subr.mxu1 %v442_v0  ;;  %v73_v12 = vld [vmem:[#allocation5 + $0x48] sm:$0xff]  ;;  %v169_v13 = vld [vmem:[#allocation7 + $0x58] sm:$0xff]  ;;  %v72_v14 = vld [vmem:[#allocation5 + $0x40] sm:$0xff] }
  0x29   :  { %299 = vmatpush3.msra.mxu0 %v78_v2  ;;  %334 = vmatpush3.msra.mxu1 %v172_v8  ;;  %v168_v15 = vld [vmem:[#allocation7 + $0x50] sm:$0xff]  ;;  %v71_v16 = vld [vmem:[#allocation5 + $0x38] sm:$0xff]  ;;  %v167_v17 = vld [vmem:[#allocation7 + $0x48] sm:$0xff] }
  0x2a   :  { %300 = vmatprep.subr.mxu0 %v442_v0  ;;  %335 = vmatprep.subr.mxu1 %v442_v0  ;;  %v70_v18 = vld [vmem:[#allocation5 + $0x30] sm:$0xff]  ;;  %v166_v19 = vld [vmem:[#allocation7 + $0x40] sm:$0xff]  ;;  %v69_v20 = vld [vmem:[#allocation5 + $0x28] sm:$0xff] }
  0x2b   :  { %301 = vmatpush3.msra.mxu0 %v77_v3  ;;  %336 = vmatpush3.msra.mxu1 %v171_v9  ;;  %v165_v21 = vld [vmem:[#allocation7 + $0x38] sm:$0xff]  ;;  %v68_v22 = vld [vmem:[#allocation5 + $0x20] sm:$0xff]  ;;  %v164_v23 = vld [vmem:[#allocation7 + $0x30] sm:$0xff] }
  0x2c   :  { %302 = vmatprep.subr.mxu0 %v442_v0  ;;  %337 = vmatprep.subr.mxu1 %v442_v0  ;;  %v67_v24 = vld [vmem:[#allocation5 + $0x18] sm:$0xff]  ;;  %v163_v25 = vld [vmem:[#allocation7 + $0x28] sm:$0xff]  ;;  %v66_v26 = vld [vmem:[#allocation5 + $0x10] sm:$0xff] }
  0x2d   :  { %303 = vmatpush3.msra.mxu0 %v76_v4  ;;  %338 = vmatpush3.msra.mxu1 %v170_v11  ;;  %v162_v27 = vld [vmem:[#allocation7 + $0x20] sm:$0xff]  ;;  %v65_v28 = vld [vmem:[#allocation5 + $0x8] sm:$0xff]  ;;  %v161_v29 = vld [vmem:[#allocation7 + $0x18] sm:$0xff] }
  0x2e   :  { %304 = vmatprep.subr.mxu0 %v442_v0  ;;  %339 = vmatprep.subr.mxu1 %v442_v0  ;;  %v64_v30 = vld [vmem:[#allocation5] sm:$0xff]  ;;  %v63_v31 = vld [vmem:[#allocation2] sm:$0xff]  ;;  %v159_v33 = vld [vmem:[#allocation7 + $0x8] sm:$0xff] }
  0x2f   :  { %305 = vmatpush3.msra.mxu0 %v75_v7  ;;  %340 = vmatpush3.msra.mxu1 %v169_v13  ;;  %v160_v32 = vld [vmem:[#allocation7 + $0x10] sm:$0xff]  ;;  %v158_v34 = vld [vmem:[#allocation7] sm:$0xff] }
  0x30   :  { %306 = vmatprep.subr.mxu0 %v442_v0  ;;  %341 = vmatprep.subr.mxu1 %v442_v0  ;;  %v260_v35 = vld [vmem:[%s529_s2] ss:$0 sm:$0xff] }
  0x31   :  { %307 = vmatpush3.msra.mxu0 %v74_v10  ;;  %342 = vmatpush3.msra.mxu1 %v168_v15  ;;  %v261_v40 = vld [vmem:[%s531_s4] ss:$0 sm:$0xff] }
  0x32   :  { %308 = vmatprep.subr.mxu0 %v442_v0  ;;  %343 = vmatprep.subr.mxu1 %v442_v0 }
  0x33   :  { %309 = vmatpush3.msra.mxu0 %v73_v12  ;;  %344 = vmatpush3.msra.mxu1 %v167_v17 }
  0x34   :  { %310 = vmatprep.subr.mxu0 %v442_v0  ;;  %345 = vmatprep.subr.mxu1 %v442_v0 }
  0x35   :  { %311 = vmatpush3.msra.mxu0 %v72_v14  ;;  %346 = vmatpush3.msra.mxu1 %v166_v19 }
  0x36   :  { %312 = vmatprep.subr.mxu0 %v442_v0  ;;  %347 = vmatprep.subr.mxu1 %v442_v0 }
  0x37   :  { %313 = vmatpush3.msra.mxu0 %v71_v16  ;;  %348 = vmatpush3.msra.mxu1 %v165_v21 }
  0x38   :  { %314 = vmatprep.subr.mxu0 %v442_v0  ;;  %349 = vmatprep.subr.mxu1 %v442_v0 }
  0x39   :  { %315 = vmatpush3.msra.mxu0 %v70_v18  ;;  %350 = vmatpush3.msra.mxu1 %v164_v23 }
  0x3a   :  { %316 = vmatprep.subr.mxu0 %v442_v0  ;;  %351 = vmatprep.subr.mxu1 %v442_v0 }
  0x3b   :  { %317 = vmatpush3.msra.mxu0 %v69_v20  ;;  %352 = vmatpush3.msra.mxu1 %v163_v25 }
  0x3c   :  { %318 = vmatprep.subr.mxu0 %v442_v0  ;;  %353 = vmatprep.subr.mxu1 %v442_v0 }
  0x3d   :  { %319 = vmatpush3.msra.mxu0 %v68_v22  ;;  %354 = vmatpush3.msra.mxu1 %v162_v27 }
  0x3e   :  { %320 = vmatprep.subr.mxu0 %v442_v0  ;;  %355 = vmatprep.subr.mxu1 %v442_v0 }
  0x3f   :  { %321 = vmatpush3.msra.mxu0 %v67_v24  ;;  %356 = vmatpush3.msra.mxu1 %v161_v29 }
  0x40   :  { %322 = vmatprep.subr.mxu0 %v442_v0  ;;  %357 = vmatprep.subr.mxu1 %v442_v0 }
  0x41   :  { %323 = vmatpush3.msra.mxu0 %v66_v26  ;;  %358 = vmatpush3.msra.mxu1 %v160_v32 }
  0x42   :  { %324 = vmatprep.subr.mxu0 %v442_v0  ;;  %359 = vmatprep.subr.mxu1 %v442_v0 }
  0x43   :  { %325 = vmatpush3.msra.mxu0 %v65_v28  ;;  %360 = vmatpush3.msra.mxu1 %v159_v33 }
  0x44   :  { %326 = vmatprep.subr.mxu0 %v442_v0  ;;  %361 = vmatprep.subr.mxu1 %v442_v0 }
  0x45   :  { %327 = vmatpush3.msra.mxu0 %v64_v30  ;;  %362 = vmatpush3.msra.mxu1 %v158_v34 }
  0x46   :  { %329 = vmatmul.mubr.f32.vlgmr.msra.gmra.mxu0 %v63_v31 }
 0x106   :  { %v153_v36 = vpop.f32.mrf.mxu0 }
 0x107   :  { %v154_v37 = vadd.f32 %v260_v35, %v153_v36 }
 0x108   :  { %v330_v38 = vpop.f32.mrf.mxu0 }
 0x109   :  { %v157_v39 = vmax.f32 %v154_v37, 0.0 }
 0x10b   :  { %364 = vmatmul.mubr.f32.vlgmr.msra.gmra.mxu1 %v157_v39 }
 0x1cb   :  { %v240_v41 = vpop.f32.mrf.mxu1 }
 0x1cc   :  { %v251_v42 = vadd.f32 %v261_v40, %v240_v41 }
 0x1cd   :  { %v365_v43 = vpop.f32.mrf.mxu1 }
 0x1ce   :  { %253 = vst.msk [vmem:[%s532_s5] sm:$0xff] %vm252_vm2, %v251_v42 }
 0x1cf   :  { %258 = vsyncpa [#allocation4], 1 }
 0x1d0   :  { %259 = vsyncpa [#allocation6], 1 }

</bundles_post_ra>
